<compile_context>
chip_gen: v5e
topology: v5e:2x2
jax: 0.10.0
libtpu: 0.0.40
codegen_flags: <defaults>
</compile_context>

<pallas_src>
import jax
import jax.numpy as jnp
import numpy as np
from jax.experimental import pallas as pl
from jax.experimental.pallas import tpu as pltpu

_OUT_PAD = 128  # lane-dense padded output width (>= 49)


def _adaptive_pool_matrix(in_size: int, out_size: int) -> np.ndarray:
    """Row-stochastic matrix reproducing torch AdaptiveAvgPool2d bin semantics:
    start = floor(i*in/out), end = ceil((i+1)*in/out)."""
    m = np.zeros((out_size, in_size), dtype=np.float32)
    for i in range(out_size):
        start = (i * in_size) // out_size
        end = -(-((i + 1) * in_size) // out_size)  # ceil
        m[i, start:end] = 1.0 / float(end - start)
    return m


def _pool_kron_matrix(h: int, w: int) -> np.ndarray:
    """K of shape (H*W, _OUT_PAD): K[h*W+w, i*7+j] = ph[i,h] * pw[j,w], rest 0."""
    ph = _adaptive_pool_matrix(h, 7)  # (7, H)
    pw = _adaptive_pool_matrix(w, 7)  # (7, W)
    k = np.kron(ph, pw).T             # (H*W, 49)
    k_pad = np.zeros((h * w, _OUT_PAD), dtype=np.float32)
    k_pad[:, : k.shape[1]] = k
    return k_pad


def _pick_c_tile(c: int, hw: int, itemsize: int,
                 budget_bytes: int = 8 * 1024 * 1024) -> int:
    """Largest multiple-of-8 divisor of C whose x block fits ~budget per buffer
    (so 2x double-buffered input stays well under scoped VMEM on v5e/v6e/v7x).
    Falls back to a single full-C block (always a legal BlockSpec)."""
    max_rows = max(8, budget_bytes // max(1, hw * itemsize))
    best = None
    for t in range(8, min(c, 1024) + 1, 8):
        if c % t == 0 and t <= max_rows:
            best = t
    return best if best is not None else c


def pool_matmul_kernel(x_ref, k_ref, o_ref):
    # x_ref: (TC, H*W)  k_ref: (H*W, 128)  o_ref: (TC, 128)
    # Single MXU matmul, f32 accumulation; no input upcast, no transpose.
    o_ref[...] = jnp.dot(
        x_ref[...], k_ref[...], preferred_element_type=jnp.float32
    ).astype(o_ref.dtype)


def data_processor_forward(x: jax.Array) -> jax.Array:
    """Equivalent of DataProcessor.forward for x of shape (1, C, H, W), C > 1.

    Returns array of shape (49, C).
    """
    n, c, h, w = x.shape
    assert n == 1, "reference module relies on squeeze() removing the batch dim"
    assert c > 1, "reference permute(1,2,0) assumes the channel dim survives squeeze"

    hw = h * w
    x_flat = x.reshape(c, hw)  # row-major contiguous reshape of (1,C,H,W) -> free

    k = jnp.asarray(_pool_kron_matrix(h, w), dtype=x.dtype)  # (H*W, 128)

    tile_c = _pick_c_tile(c, hw, np.dtype(x.dtype).itemsize)
    grid = (c // tile_c,)

    pooled = pl.pallas_call(
        pool_matmul_kernel,
        out_shape=jax.ShapeDtypeStruct((c, _OUT_PAD), x.dtype),
        grid_spec=pltpu.PrefetchScalarGridSpec(
            num_scalar_prefetch=0,
            grid=grid,
            in_specs=[
                pl.BlockSpec((tile_c, hw), lambda i: (i, 0)),
                pl.BlockSpec((hw, _OUT_PAD), lambda i: (0, 0)),
            ],
            out_specs=pl.BlockSpec((tile_c, _OUT_PAD), lambda i: (i, 0)),
        ),
        compiler_params=pltpu.CompilerParams(
            dimension_semantics=("parallel",),
        ),
    )(x_flat, k)

    # Drop lane padding, then torch: (C,7,7) -> permute(1,2,0) -> view(-1, C)
    # which on the flattened (C, 49) result is just a transpose.
    return jnp.transpose(pooled[:, :49], (1, 0))  # (49, C)


def _reference(x: jax.Array) -> jax.Array:
    # pure-JAX reference of adaptive avg pool (7,7) + squeeze/permute/view
    n, c, h, w = x.shape
    ph = jnp.asarray(_adaptive_pool_matrix(h, 7))
    pw = jnp.asarray(_adaptive_pool_matrix(w, 7))
    pooled = jnp.einsum("ih,chw,jw->cij", ph, x[0].astype(jnp.float32), pw)
    y = jnp.transpose(pooled, (1, 2, 0))
    return y.reshape(-1, c).astype(x.dtype)


if __name__ == "__main__":
    key = jax.random.PRNGKey(0)
    x = jax.random.normal(key, (1, 4, 16, 16), dtype=jnp.float32)

    out = data_processor_forward(x)
    out = jax.block_until_ready(out)

    ref = _reference(x)
    assert out.shape == (49, 4), out.shape
    np.testing.assert_allclose(np.asarray(out), np.asarray(ref), rtol=1e-5, atol=1e-5)

    print("KERNEL_OK")
</pallas_src>

<mosaic_0001>
module attributes {stable_mosaic.version = 11 : i64} {
  func.func @pool_matmul_kernel(%arg0: i32, %arg1: memref<4x256xf32, #tpu.memory_space<vmem>>, %arg2: memref<256x128xf32, #tpu.memory_space<vmem>>, %arg3: memref<4x128xf32, #tpu.memory_space<vmem>>) attributes {dimension_semantics = [#tpu.dimension_semantics<parallel>], iteration_bounds = array<i64: 1>, scalar_prefetch = 0 : i64, scratch_operands = 0 : i64, tpu.core_type = #tpu.core_type<tc>, window_params = [{transform_indices = @transform_0, window_bounds = array<i64: 4, 256>}, {pipeline_mode = #tpu.pipeline_mode<synchronous>, transform_indices = @transform_1, window_bounds = array<i64: 256, 128>}, {transform_indices = @transform_2, window_bounds = array<i64: 4, 128>}]} {
    %c0 = arith.constant 0 : index
    %c0_0 = arith.constant 0 : index
    %0 = vector.load %arg1[%c0, %c0_0] : memref<4x256xf32, #tpu.memory_space<vmem>>, vector<4x256xf32>
    %c0_1 = arith.constant 0 : index
    %c0_2 = arith.constant 0 : index
    %1 = vector.load %arg2[%c0_1, %c0_2] : memref<256x128xf32, #tpu.memory_space<vmem>>, vector<256x128xf32>
    %cst = arith.constant dense<0.000000e+00> : vector<4x128xf32>
    %2 = tpu.matmul %0, %1, %cst {dimension_numbers = #tpu.dot_dimension_numbers<[1], [0], [0], [1], [0, 0, 1, 1], [], []>} : vector<4x256xf32>, vector<256x128xf32>, vector<4x128xf32> -> vector<4x128xf32>
    %c0_3 = arith.constant 0 : index
    %c0_4 = arith.constant 0 : index
    %3 = vector.load %arg3[%c0_3, %c0_4] : memref<4x128xf32, #tpu.memory_space<vmem>>, vector<4x128xf32>
    tpu.vector_store %arg3[%c0_3, %c0_4], %2 {strides = array<i32>} : memref<4x128xf32, #tpu.memory_space<vmem>>, vector<4x128xf32>,
    return
  }
  func.func @transform_0(%arg0: i32) -> (i32, i32) {
    %c0_i32 = arith.constant 0 : i32
    %c0_i32_0 = arith.constant 0 : i32
    return %arg0, %c0_i32 : i32, i32
  }
  func.func @transform_1(%arg0: i32) -> (i32, i32) {
    %c0_i32 = arith.constant 0 : i32
    %c0_i32_0 = arith.constant 0 : i32
    %c0_i32_1 = arith.constant 0 : i32
    return %c0_i32, %c0_i32_0 : i32, i32
  }
  func.func @transform_2(%arg0: i32) -> (i32, i32) {
    %c0_i32 = arith.constant 0 : i32
    %c0_i32_0 = arith.constant 0 : i32
    return %arg0, %c0_i32 : i32, i32
  }
}

</mosaic_0001>

<bundles_post_ra>
// kernel: tpu_custom_call.1
= control target key start
LH: loop header
LB: loop body
LE: loop exit
PB: predicated region body
PF: predicated region fallthrough
CT: control target
= control target key end

     0   :  { %7 = vsyncpa [#allocation3], 0  ;;  %s252_s0 = inlined_call_operand.hbm [shape: f32[4,256], index: 0, kind: input, shape index: {}]   ;;  %s253_s1 = inlined_call_operand.hbm [shape: f32[256,128], index: 1, kind: input, shape index: {}]   ;;  %s254_s2 = inlined_call_operand.hbm [shape: f32[4,128], index: 2, kind: output, shape index: {}]  }
   0x1   :  { %8 = vsyncpa [#allocation6], 0 }
   0x2   :  { %9 = vsyncpa [#allocation4], 0  ;;  %s15_s11 = sshll.u32 %s252_s0, 4  ;;  %s223_s12 = smov [#allocation2]   ;;  %s16_s11 = int_to_ptr.hbm [resolvable:$true] %s15_s11 }
   0x3   :  { %s17_s13 = sshll.u32 %s223_s12, 4  ;;  %s25_s16 = sshll.u32 %s253_s1, 4  ;;  %s18_s13 = int_to_ptr.vmem [resolvable:$true] %s17_s13  ;;  %s26_s16 = int_to_ptr.hbm [resolvable:$true] %s25_s16 }
   0x4   :  { %20 = dma.hbm_to_vmem [thread:$0]  %s16_s11, 128, %s18_s13, [#allocation3]  }
   0x5   :  { %s224_s17 = smov [#allocation5]   ;;  %s225_s19 = smov 128  }
   0x6   :  { %s27_s18 = sshll.u32 %s224_s17, 4  ;;  %s226_s20 = smov 8   ;;  %s28_s18 = int_to_ptr.vmem [resolvable:$true] %s27_s18 }
   0x7   :  { %33 = dma.hbm_to_vmem [thread:$0]  %s26_s16, 4096, %s28_s18, [#allocation6], %s225_s19, %s225_s19, %s226_s20  }
   0x8   :  { %217 = dma.done.wait [#allocation3], 128  }
   0x9   :  { %218 = vsyncadd [#allocation3], 4294967168 }
   0xa   :  { %219 = dma.done.wait [#allocation6], 4096  }
   0xb   :  { %220 = vsyncadd [#allocation6], 4294963200  ;;  %v58_v0 = vld [vmem:[#allocation5 + $0x78] sm:$0xff]  ;;  %v57_v2 = vld [vmem:[#allocation5 + $0x70] sm:$0xff]  ;;  %s227_s0 = smov [#allocation7]   ;;  %s129_s23 = sshll.u32 %s254_s2, 4  ;;  %s130_s23 = int_to_ptr.hbm [resolvable:$true] %s129_s23 }
   0xc   :  { %v74_v1 = vld [vmem:[#allocation5 + $0xf8] sm:$0xff]  ;;  %81 = vmatpush.msra.mxu0 %v58_v0  ;;  %v73_v3 = vld [vmem:[#allocation5 + $0xf0] sm:$0xff]  ;;  %v56_v4 = vld [vmem:[#allocation5 + $0x68] sm:$0xff]  ;;  %s127_s1 = sshll.u32 %s227_s0, 4  ;;  %s128_s1 = int_to_ptr.vmem [resolvable:$true] %s127_s1 }
   0xd   :  { %101 = vmatpush.msra.mxu1 %v74_v1  ;;  %v72_v5 = vld [vmem:[#allocation5 + $0xe8] sm:$0xff]  ;;  %v55_v6 = vld [vmem:[#allocation5 + $0x60] sm:$0xff]  ;;  %v54_v8 = vld [vmem:[#allocation5 + $0x58] sm:$0xff] }
   0xe   :  { %82 = vmatpush.msra.mxu0 %v57_v2  ;;  %v71_v7 = vld [vmem:[#allocation5 + $0xe0] sm:$0xff]  ;;  %v70_v9 = vld [vmem:[#allocation5 + $0xd8] sm:$0xff]  ;;  %v53_v10 = vld [vmem:[#allocation5 + $0x50] sm:$0xff] }
   0xf   :  { %102 = vmatpush.msra.mxu1 %v73_v3  ;;  %v69_v11 = vld [vmem:[#allocation5 + $0xd0] sm:$0xff]  ;;  %v52_v12 = vld [vmem:[#allocation5 + $0x48] sm:$0xff]  ;;  %v42_v14 = vld [vmem:[#allocation2] sm:$0xff] }
  0x10   :  { %83 = vmatpush.msra.mxu0 %v56_v4  ;;  %v68_v13 = vld [vmem:[#allocation5 + $0xc8] sm:$0xff]  ;;  %76 = vst [vmem:[#allocation1] ss:$2 sm:$0xff] %v42_v14  ;;  %v51_v15 = vld [vmem:[#allocation5 + $0x40] sm:$0xff]  ;;  %v50_v17 = vld [vmem:[#allocation5 + $0x38] sm:$0xff] }
  0x11   :  { %103 = vmatpush.msra.mxu1 %v72_v5  ;;  %v67_v16 = vld [vmem:[#allocation5 + $0xc0] sm:$0xff]  ;;  %v66_v18 = vld [vmem:[#allocation5 + $0xb8] sm:$0xff]  ;;  %v49_v19 = vld [vmem:[#allocation5 + $0x30] sm:$0xff] }
  0x12   :  { %84 = vmatpush.msra.mxu0 %v55_v6  ;;  %v65_v20 = vld [vmem:[#allocation5 + $0xb0] sm:$0xff]  ;;  %v48_v21 = vld [vmem:[#allocation5 + $0x28] sm:$0xff]  ;;  %v47_v23 = vld [vmem:[#allocation5 + $0x20] sm:$0xff] }
  0x13   :  { %104 = vmatpush.msra.mxu1 %v71_v7  ;;  %v64_v22 = vld [vmem:[#allocation5 + $0xa8] sm:$0xff]  ;;  %v63_v24 = vld [vmem:[#allocation5 + $0xa0] sm:$0xff]  ;;  %v46_v25 = vld [vmem:[#allocation5 + $0x18] sm:$0xff] }
  0x14   :  { %85 = vmatpush.msra.mxu0 %v54_v8  ;;  %v62_v26 = vld [vmem:[#allocation5 + $0x98] sm:$0xff]  ;;  %v45_v27 = vld [vmem:[#allocation5 + $0x10] sm:$0xff]  ;;  %v44_v29 = vld [vmem:[#allocation5 + $0x8] sm:$0xff] }
  0x15   :  { %105 = vmatpush.msra.mxu1 %v70_v9  ;;  %v61_v28 = vld [vmem:[#allocation5 + $0x90] sm:$0xff]  ;;  %v60_v30 = vld [vmem:[#allocation5 + $0x88] sm:$0xff]  ;;  %v43_v31 = vld [vmem:[#allocation5] sm:$0xff] }
  0x16   :  { %86 = vmatpush.msra.mxu0 %v53_v10  ;;  %v59_v32 = vld [vmem:[#allocation5 + $0x80] sm:$0xff] }
  0x17   :  { %106 = vmatpush.msra.mxu1 %v69_v11  ;;  %v77_v33 = vld.sshfl [vmem:[#allocation1] sm:$0xff pattern:$0x75316420]  ;;  %v78_v34 = vld.sshfl [vmem:[#allocation1 + $0x8] sm:$0xff pattern:$0x75316420] }
  0x18   :  { %87 = vmatpush.msra.mxu0 %v52_v12 }
  0x19   :  { %107 = vmatpush.msra.mxu1 %v68_v13 }
  0x1a   :  { %88 = vmatpush.msra.mxu0 %v51_v15 }
  0x1b   :  { %108 = vmatpush.msra.mxu1 %v67_v16 }
  0x1c   :  { %89 = vmatpush.msra.mxu0 %v50_v17 }
  0x1d   :  { %109 = vmatpush.msra.mxu1 %v66_v18 }
  0x1e   :  { %90 = vmatpush.msra.mxu0 %v49_v19 }
  0x1f   :  { %110 = vmatpush.msra.mxu1 %v65_v20 }
  0x20   :  { %91 = vmatpush.msra.mxu0 %v48_v21 }
  0x21   :  { %111 = vmatpush.msra.mxu1 %v64_v22 }
  0x22   :  { %92 = vmatpush.msra.mxu0 %v47_v23 }
  0x23   :  { %112 = vmatpush.msra.mxu1 %v63_v24 }
  0x24   :  { %93 = vmatpush.msra.mxu0 %v46_v25 }
  0x25   :  { %113 = vmatpush.msra.mxu1 %v62_v26 }
  0x26   :  { %94 = vmatpush.msra.mxu0 %v45_v27 }
  0x27   :  { %114 = vmatpush.msra.mxu1 %v61_v28 }
  0x28   :  { %95 = vmatpush.msra.mxu0 %v44_v29 }
  0x29   :  { %115 = vmatpush.msra.mxu1 %v60_v30 }
  0x2a   :  { %96 = vmatpush.msra.mxu0 %v43_v31 }
  0x2b   :  { %116 = vmatpush.msra.mxu1 %v59_v32  ;;  %97 = vmatmul.f32.vlgmr.msra.gmra.mxu0 %v77_v33 }
  0x2c   :  { %117 = vmatmul.f32.vlgmr.msra.gmra.mxu1 %v78_v34 }
  0xa8   :  { %v98_v35 = vpop.f32.mrf.mxu0 }
  0xa9   :  { %v118_v36 = vpop.f32.mrf.mxu1 }
  0xaa   :  { %v119_v37 = vadd.f32 %v118_v36, %v98_v35 }
  0xac   :  { %121 = vst [vmem:[#allocation7] sm:$0xf] %v119_v37 }
  0xad   :  { %132 = dma.vmem_to_hbm [thread:$0]  %s128_s1, 64, %s130_s23, [#allocation4]  }
  0xae   :  { %221 = dma.done.wait [#allocation4], 64  }
  0xaf   :  { %222 = vsyncadd [#allocation4], 4294967232 }
  0xb0   :  { %137 = vsyncpa [#allocation3], 1 }
  0xb1   :  { %138 = vsyncpa [#allocation6], 1 }
  0xb2   :  { %139 = vsyncpa [#allocation4], 1 }

</bundles_post_ra>
